<compile_context>
chip_gen: v6e
topology: v6e:2x2x1
jax: 0.10.0
libtpu: 0.0.40
codegen_flags: <defaults>
</compile_context>

<pallas_src>
import functools
import math

import jax
import jax.numpy as jnp
from jax.experimental import pallas as pl
from jax.experimental.pallas import tpu as pltpu

_LANE = 128
_TARGET_BLOCK_BYTES = 2 * 1024 * 1024   # ~2 MiB per x/out block


# ----------------------------------------------------------------------------
# Parameter setup (matches PositionalEncoding.__init__ exactly)
# ----------------------------------------------------------------------------
def make_positional_encoding_table(d_model: int, max_len: int = 5000) -> jnp.ndarray:
    """Builds the (max_len, d_model) sinusoidal table, identical to the torch code."""
    assert d_model % 2 == 0, "d_model must be even (same restriction as the torch module)"
    position = jnp.arange(0, max_len, dtype=jnp.float32)[:, None]             # (L, 1)
    div_term = jnp.exp(
        jnp.arange(0, d_model, 2, dtype=jnp.float32)
        * -(math.log(10000.0) / d_model)
    )                                                                          # (D/2,)
    angles = position * div_term                                               # (L, D/2)
    pe = jnp.zeros((max_len, d_model), dtype=jnp.float32)
    pe = pe.at[:, 0::2].set(jnp.sin(angles))
    pe = pe.at[:, 1::2].set(jnp.cos(angles))
    return pe                                                                  # (L, D)


# ----------------------------------------------------------------------------
# Stateless counter-based hash (usable both in-kernel and in plain JAX)
# ----------------------------------------------------------------------------
def _hash_u32(x: jnp.ndarray, seed: jnp.ndarray) -> jnp.ndarray:
    """lowbias32-style uint32 mixer; good enough for a dropout Bernoulli mask."""
    x = x ^ seed
    x = x * jnp.uint32(0x9E3779B1)
    x = x ^ (x >> 15)
    x = x * jnp.uint32(0x85EBCA77)
    x = x ^ (x >> 13)
    x = x * jnp.uint32(0xC2B2AE3D)
    x = x ^ (x >> 16)
    return x


# ----------------------------------------------------------------------------
# Kernels
# ----------------------------------------------------------------------------
def _pe_add_kernel(x_ref, pe_ref, o_ref):
    # x_ref: (TB, TR, 128); pe_ref: (TR, 128) broadcast over the batch tile.
    o_ref[...] = x_ref[...] + pe_ref[...][None, :, :]


def _pe_add_dropout_kernel(seed_ref, x_ref, pe_ref, o_ref, *,
                           threshold: int, inv_keep: float, total_rows: int):
    # Training-mode path: x + pe followed by inverted dropout (scale 1/(1-p)).
    r = pl.program_id(0)          # row-tile index (outer grid axis)
    b = pl.program_id(1)          # batch-tile index (inner grid axis)
    tb, tr, tl = x_ref.shape

    # Global element index of every element in this block (wraparound in uint32
    # is fine for hashing). Mask is tiling-independent: hash(global_idx, seed).
    bat = jax.lax.broadcasted_iota(jnp.int32, (tb, tr, tl), 0) + b * tb
    row = jax.lax.broadcasted_iota(jnp.int32, (tb, tr, tl), 1) + r * tr
    ln = jax.lax.broadcasted_iota(jnp.int32, (tb, tr, tl), 2)
    idx = (bat.astype(jnp.uint32) * jnp.uint32(total_rows)
           + row.astype(jnp.uint32)) * jnp.uint32(tl) + ln.astype(jnp.uint32)

    bits = _hash_u32(idx, seed_ref[0].astype(jnp.uint32))
    keep = bits >= jnp.uint32(threshold)          # P(keep) = 1 - p, no u32->f32 convert

    y = (x_ref[...] + pe_ref[...][None, :, :]).astype(jnp.float32)
    y = jnp.where(keep, y * jnp.float32(inv_keep), jnp.zeros_like(y))
    o_ref[...] = y.astype(o_ref.dtype)


# ----------------------------------------------------------------------------
# Tiling helpers
# ----------------------------------------------------------------------------
def _pick_tiles(batch: int, rows: int, itemsize: int):
    """Pick (batch_tile, row_tile) moving ~2 MiB of lane-dense data per grid step.

    Row-tile granularity respects the packed-sublane tile: 8 rows for 32-bit,
    16 for bf16, 32 for 8-bit dtypes (unless the full row extent is used).
    """
    gran = max(8, 32 // itemsize)
    target_rows = max(gran, _TARGET_BLOCK_BYTES // (_LANE * itemsize))
    target_rows -= target_rows % gran
    if rows <= target_rows:
        tr = rows                                  # full extent: no divisibility needed
    else:
        tr = target_rows                           # multiple of gran; edge block masked
        for t in range(target_rows, gran - 1, -gran):
            if rows % t == 0:                      # prefer an exact divisor
                tr = t
                break
    tb = max(1, min(batch, target_rows // max(tr, 1)))
    return tb, tr


# ----------------------------------------------------------------------------
# Wrapper
# ----------------------------------------------------------------------------
def positional_encoding_forward(x, pe_table, *, dropout_p: float = 0.1,
                                training: bool = False, seed: int = 0):
    """Forward pass of PositionalEncoding: dropout(x + pe[:S]).

    x:        (B, S, D)
    pe_table: (max_len, D), max_len >= S
    Eval mode (training=False): dropout is the identity, matching nn.Dropout.eval().
    Training mode: caller should vary `seed` per call / per step for fresh masks.
    """
    B, S, D = x.shape
    assert pe_table.shape[0] >= S and pe_table.shape[1] == D
    assert 0.0 <= dropout_p < 1.0, "dropout_p must be in [0, 1)"
    pe_slice = pe_table[:S, :].astype(x.dtype)                 # pe[:, :x.size(1), :]

    # Lane-dense layout: flatten (S, D) and zero-pad to a multiple of 128 lanes
    # so every store is a full-width vst (no masked vst.msk). The add is
    # elementwise with pe broadcast over batch only, so flattening is legal.
    flat = S * D
    cols = ((flat + _LANE - 1) // _LANE) * _LANE
    pad = cols - flat
    x_flat = x.reshape(B, flat)
    pe_flat = pe_slice.reshape(flat)
    if pad:
        x_flat = jnp.pad(x_flat, ((0, 0), (0, pad)))
        pe_flat = jnp.pad(pe_flat, (0, pad))
    rows = cols // _LANE
    x2 = x_flat.reshape(B, rows, _LANE)
    pe2 = pe_flat.reshape(rows, _LANE)

    itemsize = jnp.dtype(x.dtype).itemsize
    tb, tr = _pick_tiles(B, rows, itemsize)

    # Batch is the innermost (fastest) grid axis: pe's block index (r, 0) stays
    # constant across consecutive steps, so Pallas skips the redundant pe DMA.
    grid = (pl.cdiv(rows, tr), pl.cdiv(B, tb))

    # index_maps take trailing scalar-prefetch refs positionally; swallow them.
    x_spec = pl.BlockSpec((tb, tr, _LANE), lambda r, b, *_: (b, r, 0))
    pe_spec = pl.BlockSpec((tr, _LANE), lambda r, b, *_: (r, 0))
    o_spec = pl.BlockSpec((tb, tr, _LANE), lambda r, b, *_: (b, r, 0))
    out_shape = jax.ShapeDtypeStruct((B, rows, _LANE), x.dtype)
    cparams = pltpu.CompilerParams(dimension_semantics=("parallel", "parallel"))

    if (not training) or dropout_p == 0.0:
        out = pl.pallas_call(
            _pe_add_kernel,
            out_shape=out_shape,
            grid_spec=pltpu.PrefetchScalarGridSpec(
                num_scalar_prefetch=0,
                grid=grid,
                in_specs=[x_spec, pe_spec],
                out_specs=o_spec,
            ),
            compiler_params=cparams,
        )(x2, pe2)
    else:
        threshold = min(int(round(dropout_p * float(1 << 32))), (1 << 32) - 1)
        kernel = functools.partial(
            _pe_add_dropout_kernel,
            threshold=threshold,
            inv_keep=1.0 / (1.0 - dropout_p),
            total_rows=rows,
        )
        seed_arr = jnp.array([seed], dtype=jnp.int32)
        out = pl.pallas_call(
            kernel,
            out_shape=out_shape,
            grid_spec=pltpu.PrefetchScalarGridSpec(
                num_scalar_prefetch=1,
                grid=grid,
                in_specs=[x_spec, pe_spec],
                out_specs=o_spec,
            ),
            compiler_params=cparams,
        )(seed_arr, x2, pe2)

    out = out.reshape(B, cols)
    if pad:
        out = out[:, :flat]
    return out.reshape(B, S, D)


# ----------------------------------------------------------------------------
# Main
# ----------------------------------------------------------------------------
if __name__ == "__main__":
    # Small shapes consistent with the module: batch=2, seq=8, d_model=32.
    B, S, D = 2, 8, 32
    MAX_LEN = 64  # any max_len >= S; table construction matches torch for any value

    key = jax.random.PRNGKey(0)
    x = jax.random.normal(key, (B, S, D), dtype=jnp.float32)

    pe_table = make_positional_encoding_table(D, max_len=MAX_LEN)
    ref = x + pe_table[None, :S, :]

    # Eval-mode forward (dropout is identity, as with module.eval() in PyTorch).
    out = positional_encoding_forward(x, pe_table, dropout_p=0.1, training=False)
    out = jax.block_until_ready(out)
    assert out.shape == (B, S, D)
    assert out.dtype == jnp.float32
    assert jnp.allclose(out, ref, atol=1e-6, rtol=1e-6)

    # Training-mode forward: inverted dropout via the stateless counter-based hash.
    # (Distributionally equivalent to torch's dropout; cannot match its RNG stream.)
    p = 0.1
    seed = 1234
    out_tr = positional_encoding_forward(x, pe_table, dropout_p=p, training=True,
                                         seed=seed)
    out_tr = jax.block_until_ready(out_tr)
    assert out_tr.shape == (B, S, D)
    assert bool(jnp.all(jnp.isfinite(out_tr)))

    # Reconstruct the exact same mask with plain JAX and compare element-wise.
    rows = (S * D) // _LANE
    threshold = min(int(round(p * float(1 << 32))), (1 << 32) - 1)
    idx = jnp.arange(B * rows * _LANE, dtype=jnp.uint32).reshape(B, rows, _LANE)
    mask = (_hash_u32(idx, jnp.uint32(seed)) >= jnp.uint32(threshold)).reshape(B, S, D)
    expected = jnp.where(mask, ref * jnp.float32(1.0 / (1.0 - p)), 0.0)
    assert jnp.allclose(out_tr, expected, rtol=1e-6, atol=1e-6)
    assert bool(jnp.any(out_tr != 0.0))

    print("KERNEL_OK")
</pallas_src>

<mosaic_0001>
module attributes {stable_mosaic.version = 11 : i64} {
  func.func @_pe_add_kernel(%arg0: i32, %arg1: i32, %arg2: memref<2x2x128xf32, #tpu.memory_space<vmem>>, %arg3: memref<2x128xf32, #tpu.memory_space<vmem>>, %arg4: memref<2x2x128xf32, #tpu.memory_space<vmem>>) attributes {dimension_semantics = [#tpu.dimension_semantics<parallel>, #tpu.dimension_semantics<parallel>], iteration_bounds = array<i64: 1, 1>, scalar_prefetch = 0 : i64, scratch_operands = 0 : i64, tpu.core_type = #tpu.core_type<tc>, window_params = [{transform_indices = @transform_0, window_bounds = array<i64: 2, 2, 128>}, {transform_indices = @transform_1, window_bounds = array<i64: 2, 128>}, {transform_indices = @transform_2, window_bounds = array<i64: 2, 2, 128>}]} {
    %c0 = arith.constant 0 : index
    %c0_0 = arith.constant 0 : index
    %c0_1 = arith.constant 0 : index
    %0 = vector.load %arg2[%c0, %c0_0, %c0_1] : memref<2x2x128xf32, #tpu.memory_space<vmem>>, vector<2x2x128xf32>
    %c0_2 = arith.constant 0 : index
    %c0_3 = arith.constant 0 : index
    %1 = vector.load %arg3[%c0_2, %c0_3] : memref<2x128xf32, #tpu.memory_space<vmem>>, vector<2x128xf32>
    %2 = vector.shape_cast %1 : vector<2x128xf32> to vector<1x2x128xf32>
    %3 = vector.broadcast %2 : vector<1x2x128xf32> to vector<2x2x128xf32>
    %4 = arith.addf %0, %3 : vector<2x2x128xf32>
    %c0_4 = arith.constant 0 : index
    %c0_5 = arith.constant 0 : index
    %c0_6 = arith.constant 0 : index
    %5 = vector.load %arg4[%c0_4, %c0_5, %c0_6] : memref<2x2x128xf32, #tpu.memory_space<vmem>>, vector<2x2x128xf32>
    tpu.vector_store %arg4[%c0_4, %c0_5, %c0_6], %4 {strides = array<i32>} : memref<2x2x128xf32, #tpu.memory_space<vmem>>, vector<2x2x128xf32>,
    return
  }
  func.func @transform_0(%arg0: i32, %arg1: i32) -> (i32, i32, i32) {
    %c0_i32 = arith.constant 0 : i32
    %c0_i32_0 = arith.constant 0 : i32
    return %arg1, %arg0, %c0_i32 : i32, i32, i32
  }
  func.func @transform_1(%arg0: i32, %arg1: i32) -> (i32, i32) {
    %c0_i32 = arith.constant 0 : i32
    %c0_i32_0 = arith.constant 0 : i32
    return %arg0, %c0_i32 : i32, i32
  }
  func.func @transform_2(%arg0: i32, %arg1: i32) -> (i32, i32, i32) {
    %c0_i32 = arith.constant 0 : i32
    %c0_i32_0 = arith.constant 0 : i32
    return %arg1, %arg0, %c0_i32 : i32, i32, i32
  }
}

</mosaic_0001>

<bundles_post_ra>
// kernel: tpu_custom_call.1
= control target key start
LH: loop header
LB: loop body
LE: loop exit
PB: predicated region body
PF: predicated region fallthrough
CT: control target
= control target key end

     0   :  { %7 = vsyncpa [#allocation3], 0  ;;  %s169_s0 = inlined_call_operand.hbm [shape: f32[2,2,128], index: 0, kind: input, shape index: {}]   ;;  %s170_s1 = inlined_call_operand.hbm [shape: f32[2,128], index: 1, kind: input, shape index: {}]   ;;  %s171_s2 = inlined_call_operand.hbm [shape: f32[2,2,128], index: 2, kind: output, shape index: {}]  }
   0x1   :  { %8 = vsyncpa [#allocation6], 0 }
   0x2   :  { %9 = vsyncpa [#allocation4], 0  ;;  %s134_s9 = smov [#allocation2]  }
   0x3   :  { %s15_s10 = sshll.u32 %s134_s9, 4  ;;  %s16_s10 = int_to_ptr.vmem [resolvable:$true] %s15_s10 }
   0x4   :  { %s76_s11 = scalar_lea.vmem %s16_s10, 64  ;;  %p81_p1 = scmp.lt.s32.totalorder %s16_s10, %s16_s10 }
   0x5   :  { %p77_p0 = scmp.ne.s32.totalorder %s16_s10, %s76_s11  ;;  %p82_p2 = scmp.lt.s32.totalorder %s76_s11, %s76_s11 }
   0x7   :  { %p83_p3 = por %p82_p2, %p81_p1 }
   0x9   :  { %p84_p4 = pnand %p83_p3, %p77_p0 }
   0xb   :  { %87 = shalt.err (!%p84_p4)
}
   0xc   :  { %s135_s12 = smov 32   ;;  %s136_s13 = smov 2  }
   0xd   :  { %21 = dma.hbm_to_vmem [thread:$0]  %s169_s0, 64, %s16_s10, [#allocation3], %s135_s12, %s135_s12, %s136_s13  }
   0xe   :  { %s137_s16 = smov [#allocation5]  }
   0xf   :  { %s28_s17 = sshll.u32 %s137_s16, 4  ;;  %s29_s17 = int_to_ptr.vmem [resolvable:$true] %s28_s17 }
  0x10   :  { %s96_s18 = scalar_lea.vmem %s29_s17, 32  ;;  %p101_p6 = scmp.lt.s32.totalorder %s29_s17, %s29_s17 }
  0x11   :  { %p97_p5 = scmp.ne.s32.totalorder %s29_s17, %s96_s18  ;;  %p102_p7 = scmp.lt.s32.totalorder %s96_s18, %s96_s18 }
  0x13   :  { %p103_p8 = por %p102_p7, %p101_p6 }
  0x15   :  { %p104_p9 = pnand %p103_p8, %p97_p5 }
  0x17   :  { %107 = shalt.err (!%p104_p9)
}
  0x18   :  { %31 = dma.hbm_to_vmem [thread:$0]  %s170_s1, 32, %s29_s17, [#allocation6]  }
  0x19   :  { %128 = dma.done.wait [#allocation3], 64  }
  0x1a   :  { %129 = vsyncadd [#allocation3], 4294967232 }
  0x1b   :  { %130 = dma.done.wait [#allocation6], 32  }
  0x1c   :  { %131 = vsyncadd [#allocation6], 4294967264  ;;  %s138_s21 = smov [#allocation7]   ;;  %v38_v0 = vld [vmem:[#allocation2] sm:$0x3] }
  0x1d   :  { %s50_s0 = sshll.u32 %s138_s21, 4  ;;  %v40_v1 = vld [vmem:[#allocation5] sm:$0x3]  ;;  %v39_v2 = vld [vmem:[#allocation2 + $0x2] sm:$0x3]  ;;  %s51_s0 = int_to_ptr.vmem [resolvable:$true] %s50_s0 }
  0x1e   :  { %v41_v3 = vadd.f32 %v40_v1, %v38_v0  ;;  %v42_v4 = vadd.f32 %v40_v1, %v39_v2  ;;  %s108_s22 = scalar_lea.vmem %s51_s0, 64  ;;  %p113_p11 = scmp.lt.s32.totalorder %s51_s0, %s51_s0 }
  0x1f   :  { %p109_p10 = scmp.ne.s32.totalorder %s51_s0, %s108_s22  ;;  %p114_p12 = scmp.lt.s32.totalorder %s108_s22, %s108_s22 }
  0x20   :  { %43 = vst [vmem:[#allocation7] sm:$0x3] %v41_v3  ;;  %44 = vst [vmem:[#allocation7 + $0x2] sm:$0x3] %v42_v4 }
  0x21   :  { %p115_p13 = por %p114_p12, %p113_p11 }
  0x23   :  { %p116_p0 = pnand %p115_p13, %p109_p10 }
  0x25   :  { %119 = shalt.err (!%p116_p0)
}
  0x26   :  { %56 = dma.vmem_to_hbm [thread:$0]  %s51_s0, 64, %s171_s2, [#allocation4], %s135_s12, %s135_s12, %s136_s13  }
  0x27   :  { %132 = dma.done.wait [#allocation4], 64  }
  0x28   :  { %133 = vsyncadd [#allocation4], 4294967232 }
  0x29   :  { %60 = vsyncpa [#allocation3], 1 }
  0x2a   :  { %61 = vsyncpa [#allocation6], 1 }
  0x2b   :  { %62 = vsyncpa [#allocation4], 1 }

</bundles_post_ra>
